<compile_context>
chip_gen: v7x
topology: tpu7x:2x2x1
jax: 0.10.0
libtpu: 0.0.40
codegen_flags: <defaults>
</compile_context>

<pallas_src>
import math

import jax
import jax.numpy as jnp
from jax.experimental import pallas as pl
from jax.experimental.pallas import tpu as pltpu


def _mask_mul_kernel(m_ref, x_ref, o_ref):
    # m_ref: (1, L) pixel-mask tile (1.0 keep / 0.0 masked)
    # x_ref, o_ref: (tn, L) frame-pixel tiles.
    # The (1, L) mask broadcasts over the sublane axis as a cheap stride-0
    # read; no explicit broadcast materialization.
    o_ref[...] = x_ref[...] * m_ref[...]


def _build_pixel_mask(key, T, H, patch_size, mask_ratio, mode, dtype):
    """(T, H, W) mask: 1.0 keep, 0.0 masked. Matches the torch semantics."""
    sidelen = H // patch_size
    num_patches = sidelen * sidelen
    num_masked = int(num_patches * mask_ratio)

    def one_frame_mask(k):
        # torch.randperm(num_patches)[:num_masked]; idx -> (h=idx%side, w=idx//side)
        idx = jax.random.permutation(k, num_patches)[:num_masked]
        h_idx = idx % sidelen
        w_idx = idx // sidelen
        m = jnp.ones((sidelen, sidelen), dtype)
        return m.at[h_idx, w_idx].set(jnp.zeros((), dtype))

    if mode == "frame":
        patch_mask = jax.vmap(one_frame_mask)(jax.random.split(key, T))
    else:  # "video": one pattern shared by all frames
        patch_mask = jnp.broadcast_to(one_frame_mask(key),
                                      (T, sidelen, sidelen))

    # Patch -> pixel resolution (tiny glue vs. the N*T*H*W hot path).
    return jnp.repeat(jnp.repeat(patch_mask, patch_size, axis=1),
                      patch_size, axis=2)


def _vmem_capacity_bytes():
    """Physical VMEM of the attached TPU; v7x-safe fallback if unavailable."""
    try:
        return int(pltpu.get_tpu_info().vmem_capacity_bytes)
    except Exception:
        return 64 * 1024 * 1024


def mask_patches_pallas(frames, *, patch_size=8, mask_ratio=0.5, mode="frame",
                        key=None, force_pallas=False, target_block_bytes=None):
    """Functional equivalent of MaskPatches.forward (returns masked copy).

    Callers under jit should donate `frames` so the input/output aliasing
    avoids a defensive copy; otherwise the result is still correct.
    """
    assert frames.shape[-1] == frames.shape[-2], (
        f"Expected [...,T,H,W] with H==W, got {frames.shape}")
    assert mode in ("frame", "video"), "mode must be in ['frame', 'video']"
    H = frames.shape[-1]
    T = frames.shape[-3]
    assert H % patch_size == 0, f"patch_size={patch_size} must divide H=W={H}"
    if key is None:
        key = jax.random.PRNGKey(0)

    pixel_mask = _build_pixel_mask(key, T, H, patch_size, mask_ratio, mode,
                                   frames.dtype)                    # (T, H, W)

    lead = frames.shape[:-3]
    N = int(math.prod(lead)) if lead else 1
    HW = H * H
    itemsize = jnp.dtype(frames.dtype).itemsize
    total_bytes = N * T * HW * itemsize

    # Tiny tensors: fixed pallas_call / per-grid-step overhead dominates and a
    # standalone kernel forecloses fusion with producers/consumers of frames.
    if not force_pallas and total_bytes < (4 << 20):
        out = frames.reshape((N, T, H, H)) * pixel_mask[None]
        return out.reshape(frames.shape)

    # ---- generation-aware sizing ---------------------------------------------
    vmem_cap = _vmem_capacity_bytes()
    if target_block_bytes is None:
        target_block_bytes = vmem_cap // 8        # 8 MiB on v7x, 16 MiB on v5e/v6e
    vmem_limit = int(vmem_cap * 0.6)              # double-buffered in+out = 4x block

    # ---- lane-dense 2D layout ------------------------------------------------
    x2d = frames.reshape(N, T * HW)
    mask2d = pixel_mask.reshape(1, T * HW)
    total_lane = T * HW
    sublane = {4: 8, 2: 16, 1: 32}.get(itemsize, 8)

    # Lane-block selection (never exceeds target_block_bytes even at tn=sublane):
    if sublane * total_lane * itemsize <= target_block_bytes:
        # (A) whole row chunk fits: 1-D grid over N, fully contiguous frame DMA,
        # mask DMA'd exactly once.
        lane_block = total_lane
        lane_chunks = 1
    elif HW % 128 == 0 and sublane * HW * itemsize <= target_block_bytes:
        # (B) group g whole frames per lane block (lane_block multiple of 128).
        g_max = max(1, target_block_bytes // (sublane * HW * itemsize))
        g = min(T, g_max)
        for d in range(g, 0, -1):                 # prefer uniform blocks
            if T % d == 0:
                g = d
                break
        lane_block = g * HW
        lane_chunks = pl.cdiv(T, g)
    else:
        # (C) generic: tile the flat lane axis in 128-multiple chunks (covers
        # HW % 128 != 0 and huge-frame cases without VMEM blow-ups).
        lane_block = max(128,
                         (target_block_bytes // (sublane * itemsize)) // 128 * 128)
        lane_block = min(lane_block, total_lane)
        lane_chunks = pl.cdiv(total_lane, lane_block)

    # ---- tile N to hit the block budget ---------------------------------------
    bytes_per_row = lane_block * itemsize
    max_rows = max(1, target_block_bytes // bytes_per_row)
    if max_rows >= N:
        tn = N                                    # full-extent block: always legal
    else:
        tn = max(sublane, (max_rows // sublane) * sublane)
    n_chunks = pl.cdiv(N, tn)

    # v7x megacore: make sure the (parallel) grid has >=2 steps when possible so
    # both TensorCores get work; near-free on 1-TC chips.
    if lane_chunks * n_chunks < 2 and N >= 2 * sublane:
        tn = pl.cdiv(pl.cdiv(N, 2), sublane) * sublane
        n_chunks = pl.cdiv(N, tn)

    cost = pl.CostEstimate(
        flops=N * total_lane,                       # one multiply per element
        transcendentals=0,
        bytes_accessed=(2 * N * total_lane + total_lane) * itemsize,
    )

    out2d = pl.pallas_call(
        _mask_mul_kernel,
        out_shape=jax.ShapeDtypeStruct((N, total_lane), frames.dtype),
        grid=(lane_chunks, n_chunks),             # (t, n); n innermost so the
                                                  # mask tile stays VMEM-resident
        in_specs=[
            pl.BlockSpec((1, lane_block), lambda t, n: (0, t)),    # pixel mask
            pl.BlockSpec((tn, lane_block), lambda t, n: (n, t)),   # frames
        ],
        out_specs=pl.BlockSpec((tn, lane_block), lambda t, n: (n, t)),
        input_output_aliases={1: 0},              # reuse the frames HBM buffer
        cost_estimate=cost,
        compiler_params=pltpu.CompilerParams(
            dimension_semantics=("parallel", "parallel"),
            vmem_limit_bytes=vmem_limit),
    )(mask2d, x2d)

    return out2d.reshape(frames.shape)


if __name__ == "__main__":
    key = jax.random.PRNGKey(0)

    # --- Test 1: default sizing, 'frame' mode, [B, C, T, H, W] ----------------
    B, C, T, H = 2, 3, 4, 32
    patch_size, mask_ratio = 8, 0.5
    k_data, k_mask, k_data2, k_mask2 = jax.random.split(key, 4)
    frames = jax.random.normal(k_data, (B, C, T, H, H), dtype=jnp.float32)

    ref_mask = _build_pixel_mask(k_mask, T, H, patch_size, mask_ratio, "frame",
                                 frames.dtype)
    ref = frames * ref_mask[None, None]

    out = mask_patches_pallas(frames, patch_size=patch_size,
                              mask_ratio=mask_ratio, mode="frame", key=k_mask,
                              force_pallas=True)   # exercise the Pallas path
    out = jax.block_until_ready(out)
    assert out.shape == frames.shape
    assert jnp.allclose(out, ref), float(jnp.max(jnp.abs(out - ref)))

    # Exactly mask_ratio of each frame's patches are zeroed by the mask.
    sidelen = H // patch_size
    num_masked = int(sidelen * sidelen * mask_ratio)
    masked_frac = float((ref_mask == 0.0).mean())
    assert abs(masked_frac - num_masked / (sidelen * sidelen)) < 1e-6

    # --- Test 2: small forced block -> multi-chunk grid with a partial final
    # N block (least-exercised path), 'video' mode ------------------------------
    B2, C2, T2, H2 = 5, 3, 4, 32       # N = 15 rows, tiled as 8 + 7 (partial)
    frames2 = jax.random.normal(k_data2, (B2, C2, T2, H2, H2), dtype=jnp.float32)
    ref_mask2 = _build_pixel_mask(k_mask2, T2, H2, patch_size, mask_ratio,
                                  "video", frames2.dtype)
    ref2 = frames2 * ref_mask2[None, None]

    out2 = mask_patches_pallas(frames2, patch_size=patch_size,
                               mask_ratio=mask_ratio, mode="video", key=k_mask2,
                               force_pallas=True,
                               target_block_bytes=64 * 1024)
    out2 = jax.block_until_ready(out2)
    assert out2.shape == frames2.shape
    assert jnp.allclose(out2, ref2), float(jnp.max(jnp.abs(out2 - ref2)))

    print("KERNEL_OK")
</pallas_src>

<mosaic_0001>
module attributes {stable_mosaic.version = 11 : i64} {
  func.func @_mask_mul_kernel(%arg0: i32, %arg1: i32, %arg2: memref<1x4096xf32, #tpu.memory_space<vmem>>, %arg3: memref<6x4096xf32, #tpu.memory_space<vmem>>, %arg4: memref<6x4096xf32, #tpu.memory_space<vmem>>) attributes {dimension_semantics = [#tpu.dimension_semantics<parallel>, #tpu.dimension_semantics<parallel>], iteration_bounds = array<i64: 1, 1>, scalar_prefetch = 0 : i64, scratch_operands = 0 : i64, tpu.core_type = #tpu.core_type<tc>, window_params = [{transform_indices = @transform_0, window_bounds = array<i64: 1, 4096>}, {transform_indices = @transform_1, window_bounds = array<i64: 6, 4096>}, {transform_indices = @transform_2, window_bounds = array<i64: 6, 4096>}]} {
    %c0 = arith.constant 0 : index
    %c0_0 = arith.constant 0 : index
    %0 = vector.load %arg3[%c0, %c0_0] : memref<6x4096xf32, #tpu.memory_space<vmem>>, vector<6x4096xf32>
    %c0_1 = arith.constant 0 : index
    %c0_2 = arith.constant 0 : index
    %1 = vector.load %arg2[%c0_1, %c0_2] : memref<1x4096xf32, #tpu.memory_space<vmem>>, vector<1x4096xf32>
    %2 = vector.broadcast %1 : vector<1x4096xf32> to vector<6x4096xf32>
    %3 = arith.mulf %0, %2 : vector<6x4096xf32>
    %c0_3 = arith.constant 0 : index
    %c0_4 = arith.constant 0 : index
    %4 = vector.load %arg4[%c0_3, %c0_4] : memref<6x4096xf32, #tpu.memory_space<vmem>>, vector<6x4096xf32>
    tpu.vector_store %arg4[%c0_3, %c0_4], %3 {strides = array<i32>} : memref<6x4096xf32, #tpu.memory_space<vmem>>, vector<6x4096xf32>,
    return
  }
  func.func @transform_0(%arg0: i32, %arg1: i32) -> (i32, i32) {
    %c0_i32 = arith.constant 0 : i32
    %c0_i32_0 = arith.constant 0 : i32
    return %c0_i32, %arg0 : i32, i32
  }
  func.func @transform_1(%arg0: i32, %arg1: i32) -> (i32, i32) {
    %c0_i32 = arith.constant 0 : i32
    return %arg1, %arg0 : i32, i32
  }
  func.func @transform_2(%arg0: i32, %arg1: i32) -> (i32, i32) {
    %c0_i32 = arith.constant 0 : i32
    return %arg1, %arg0 : i32, i32
  }
}

</mosaic_0001>

<bundles_post_ra>
// kernel: tpu_custom_call.1
= control target key start
LH: loop header
LB: loop body
LE: loop exit
PB: predicated region body
PF: predicated region fallthrough
CT: control target
= control target key end

     0   :  { %7 = vsyncpa [#allocation3], 0  ;;  %s457_s0 = inlined_call_operand.vmem [shape: f32[1,4096], index: 0, kind: input, shape index: {}]   ;;  %s458_s1 = inlined_call_operand.hbm [shape: f32[6,4096], index: 1, kind: input, shape index: {}, may-alias: {1,2}]   ;;  %s459_s2 = inlined_call_operand.hbm [shape: f32[6,4096], index: 2, kind: output, shape index: {}, may-alias: {1,2}]  }
   0x1   :  { %8 = vsyncpa [#allocation4], 0  ;;  %s353_s9 = smov [#allocation2]   ;;  %s305_s13 = scalar_lea.hbm %s458_s1, 4096 }
   0x2   :  { %s17_s10 = sshll.u32 %s353_s9, 4  ;;  %p306_p0 = scmp.ne.s32.totalorder %s458_s1, %s305_s13  ;;  %s18_s10 = int_to_ptr.vmem [resolvable:$true] %s17_s10 }
   0x3   :  { %p309_p1 = scmp.lt.u32.totalorder %s305_s13, %s458_s1 }
   0x5   :  { %p311_p2 = pnand %p309_p1, %p306_p0 }
   0x7   :  { %314 = shalt.err (!%p311_p2)
}
   0x8   :  { %s315_s18 = scalar_lea.vmem %s18_s10, 4096  ;;  %p320_p4 = scmp.lt.s32.totalorder %s18_s10, %s18_s10 }
   0x9   :  { %p316_p3 = scmp.ne.s32.totalorder %s18_s10, %s315_s18  ;;  %p321_p5 = scmp.lt.s32.totalorder %s315_s18, %s315_s18 }
   0xb   :  { %p322_p6 = por %p321_p5, %p320_p4 }
   0xd   :  { %p323_p7 = pnand %p322_p6, %p316_p3 }
   0xf   :  { %326 = shalt.err (!%p323_p7)
}
  0x10   :  { %20 = dma.hbm_to_vmem [thread:$0]  %s458_s1, 4096, %s18_s10, [#allocation3]  }
  0x11   :  { %349 = dma.done.wait [#allocation3], 4096  }
  0x12   :  { %350 = vsyncadd [#allocation3], 4294963200  ;;  %v64_v0 = vlaneseq  ;;  %v24_v10 = vld [vmem:[#allocation2] sm:$0x3f]  ;;  %v25_v12 = vld [vmem:[#allocation2 + $0x8] sm:$0x3f] }
  0x13   :  { %v56_v11 = vld [vmem:[%s457_s0] sm:$0xff]  ;;  %v26_v15 = vld [vmem:[#allocation2 + $0x10] sm:$0x3f]  ;;  %v27_v17 = vld [vmem:[#allocation2 + $0x18] sm:$0x3f]  ;;  %s354_s28 = smov [#allocation5]  }
  0x14   :  { %v65_v1 = vshrl.u32 %v64_v0, 7  ;;  %v28_v19 = vld [vmem:[#allocation2 + $0x20] sm:$0x3f]  ;;  %v29_v21 = vld [vmem:[#allocation2 + $0x28] sm:$0x3f]  ;;  %v58_v52 = vld [vmem:[%s457_s0 + $0x10] sm:$0xff] }
  0x15   :  { %v30_v23 = vld [vmem:[#allocation2 + $0x30] sm:$0x3f]  ;;  %v31_v25 = vld [vmem:[#allocation2 + $0x38] sm:$0x3f]  ;;  %v32_v31 = vld [vmem:[#allocation2 + $0x40] sm:$0x3f] }
  0x16   :  { %v382_v2 = vsub.s32 0, %v65_v1  ;;  %v384_v3 = vsub.s32 1, %v65_v1  ;;  %v386_v4 = vsub.s32 2, %v65_v1  ;;  %v388_v5 = vsub.s32 3, %v65_v1  ;;  %v57_v32 = vld [vmem:[%s457_s0 + $0x8] sm:$0xff]  ;;  %s434_s29 = sshll.u32 %s354_s28, 4  ;;  %s295_s29 = int_to_ptr.vmem [resolvable:$true] %s434_s29 }
  0x17   :  { %v390_v6 = vsub.s32 4, %v65_v1  ;;  %v392_v7 = vsub.s32 5, %v65_v1  ;;  %v394_v8 = vsub.s32 6, %v65_v1  ;;  %v396_v9 = vsub.s32 7, %v65_v1  ;;  %v33_v33 = vld [vmem:[#allocation2 + $0x48] sm:$0x3f]  ;;  %p332_p9 = scmp.lt.s32.totalorder %s295_s29, %s295_s29 }
  0x18   :  { %v67_v13 = vrot.slane %v56_v11, %v382_v2  ;;  %v71_v14 = vrot.slane %v56_v11, %v384_v3  ;;  %v75_v16 = vrot.slane %v56_v11, %v386_v4  ;;  %v79_v18 = vrot.slane %v56_v11, %v388_v5  ;;  %v34_v38 = vld [vmem:[#allocation2 + $0x50] sm:$0x3f]  ;;  %v35_v39 = vld [vmem:[#allocation2 + $0x58] sm:$0x3f]  ;;  %v36_v40 = vld [vmem:[#allocation2 + $0x60] sm:$0x3f] }
  0x19   :  { %v83_v20 = vrot.slane %v56_v11, %v390_v6  ;;  %v87_v22 = vrot.slane %v56_v11, %v392_v7  ;;  %v91_v24 = vrot.slane %v56_v11, %v394_v8  ;;  %v95_v26 = vrot.slane %v56_v11, %v396_v9  ;;  %v37_v45 = vld [vmem:[#allocation2 + $0x68] sm:$0x3f]  ;;  %v38_v46 = vld [vmem:[#allocation2 + $0x70] sm:$0x3f]  ;;  %v39_v47 = vld [vmem:[#allocation2 + $0x78] sm:$0x3f] }
  0x1a   :  { %v224_v27 = vmul.f32 %v67_v13, %v24_v10  ;;  %v225_v28 = vmul.f32 %v71_v14, %v25_v12  ;;  %v226_v29 = vmul.f32 %v75_v16, %v26_v15  ;;  %v227_v30 = vmul.f32 %v79_v18, %v27_v17  ;;  %v40_v57 = vld [vmem:[#allocation2 + $0x80] sm:$0x3f]  ;;  %v41_v58 = vld [vmem:[#allocation2 + $0x88] sm:$0x3f]  ;;  %v42_v63 = vld [vmem:[#allocation2 + $0x90] sm:$0x3f] }
  0x1b   :  { %v228_v34 = vmul.f32 %v83_v20, %v28_v19  ;;  %v229_v35 = vmul.f32 %v87_v22, %v29_v21  ;;  %v230_v36 = vmul.f32 %v91_v24, %v30_v23  ;;  %v231_v37 = vmul.f32 %v95_v26, %v31_v25  ;;  %v43_v0 = vld [vmem:[#allocation2 + $0x98] sm:$0x3f]  ;;  %v44_v1 = vld [vmem:[#allocation2 + $0xa0] sm:$0x3f]  ;;  %v45_v14 = vld [vmem:[#allocation2 + $0xa8] sm:$0x3f] }
  0x1c   :  { %256 = vst [vmem:[#allocation5] sm:$0x3f] %v224_v27  ;;  %257 = vst [vmem:[#allocation5 + $0x8] sm:$0x3f] %v225_v28  ;;  %v99_v41 = vrot.slane %v57_v32, %v382_v2  ;;  %v103_v42 = vrot.slane %v57_v32, %v384_v3  ;;  %v107_v43 = vrot.slane %v57_v32, %v386_v4  ;;  %v46_v15 = vld [vmem:[#allocation2 + $0xb0] sm:$0x3f] }
  0x1d   :  { %258 = vst [vmem:[#allocation5 + $0x10] sm:$0x3f] %v226_v29  ;;  %259 = vst [vmem:[#allocation5 + $0x18] sm:$0x3f] %v227_v30  ;;  %v111_v44 = vrot.slane %v57_v32, %v388_v5  ;;  %v115_v48 = vrot.slane %v57_v32, %v390_v6  ;;  %v119_v49 = vrot.slane %v57_v32, %v392_v7  ;;  %v47_v16 = vld [vmem:[#allocation2 + $0xb8] sm:$0x3f] }
  0x1e   :  { %260 = vst [vmem:[#allocation5 + $0x20] sm:$0x3f] %v228_v34  ;;  %261 = vst [vmem:[#allocation5 + $0x28] sm:$0x3f] %v229_v35  ;;  %v123_v50 = vrot.slane %v57_v32, %v394_v8  ;;  %v127_v51 = vrot.slane %v57_v32, %v396_v9  ;;  %v232_v53 = vmul.f32 %v99_v41, %v32_v31  ;;  %v59_v21 = vld [vmem:[%s457_s0 + $0x18] sm:$0xff]  ;;  %s327_s0 = scalar_lea.vmem %s295_s29, 4096 }
  0x1f   :  { %262 = vst [vmem:[#allocation5 + $0x30] sm:$0x3f] %v230_v36  ;;  %263 = vst [vmem:[#allocation5 + $0x38] sm:$0x3f] %v231_v37  ;;  %v233_v54 = vmul.f32 %v103_v42, %v33_v33  ;;  %v234_v55 = vmul.f32 %v107_v43, %v34_v38  ;;  %v235_v56 = vmul.f32 %v111_v44, %v35_v39  ;;  %v48_v26 = vld [vmem:[#allocation2 + $0xc0] sm:$0x3f]  ;;  %p328_p8 = scmp.ne.s32.totalorder %s295_s29, %s327_s0  ;;  %p333_p10 = scmp.lt.s32.totalorder %s327_s0, %s327_s0 }
  0x20   :  { %v236_v59 = vmul.f32 %v115_v48, %v36_v40  ;;  %v237_v60 = vmul.f32 %v119_v49, %v37_v45  ;;  %v238_v61 = vmul.f32 %v123_v50, %v38_v46  ;;  %v239_v62 = vmul.f32 %v127_v51, %v39_v47  ;;  %264 = vst [vmem:[#allocation5 + $0x40] sm:$0x3f] %v232_v53  ;;  %v49_v27 = vld [vmem:[#allocation2 + $0xc8] sm:$0x3f]  ;;  %v50_v32 = vld [vmem:[#allocation2 + $0xd0] sm:$0x3f] }
  0x21   :  { %265 = vst [vmem:[#allocation5 + $0x48] sm:$0x3f] %v233_v54  ;;  %266 = vst [vmem:[#allocation5 + $0x50] sm:$0x3f] %v234_v55  ;;  %v131_v10 = vrot.slane %v58_v52, %v382_v2  ;;  %v135_v11 = vrot.slane %v58_v52, %v384_v3  ;;  %v139_v12 = vrot.slane %v58_v52, %v386_v4  ;;  %v51_v33 = vld [vmem:[#allocation2 + $0xd8] sm:$0x3f]  ;;  %p334_p11 = por %p333_p10, %p332_p9 }
  0x22   :  { %267 = vst [vmem:[#allocation5 + $0x58] sm:$0x3f] %v235_v56  ;;  %v143_v13 = vrot.slane %v58_v52, %v388_v5  ;;  %268 = vst [vmem:[#allocation5 + $0x60] sm:$0x3f] %v236_v59  ;;  %v147_v17 = vrot.slane %v58_v52, %v390_v6  ;;  %v151_v18 = vrot.slane %v58_v52, %v392_v7  ;;  %v52_v34 = vld [vmem:[#allocation2 + $0xe0] sm:$0x3f] }
  0x23   :  { %269 = vst [vmem:[#allocation5 + $0x68] sm:$0x3f] %v237_v60  ;;  %270 = vst [vmem:[#allocation5 + $0x70] sm:$0x3f] %v238_v61  ;;  %v155_v19 = vrot.slane %v58_v52, %v394_v8  ;;  %v159_v20 = vrot.slane %v58_v52, %v396_v9  ;;  %v240_v22 = vmul.f32 %v131_v10, %v40_v57  ;;  %v53_v39 = vld [vmem:[#allocation2 + $0xe8] sm:$0x3f]  ;;  %p335_p12 = pnand %p334_p11, %p328_p8 }
  0x24   :  { %271 = vst [vmem:[#allocation5 + $0x78] sm:$0x3f] %v239_v62  ;;  %v241_v23 = vmul.f32 %v135_v11, %v41_v58  ;;  %v242_v24 = vmul.f32 %v139_v12, %v42_v63  ;;  %v243_v25 = vmul.f32 %v143_v13, %v43_v0  ;;  %v244_v28 = vmul.f32 %v147_v17, %v44_v1  ;;  %v54_v40 = vld [vmem:[#allocation2 + $0xf0] sm:$0x3f]  ;;  %v55_v41 = vld [vmem:[#allocation2 + $0xf8] sm:$0x3f] }
  0x25   :  { %v245_v29 = vmul.f32 %v151_v18, %v45_v14  ;;  %v246_v30 = vmul.f32 %v155_v19, %v46_v15  ;;  %v247_v31 = vmul.f32 %v159_v20, %v47_v16  ;;  %272 = vst [vmem:[#allocation5 + $0x80] sm:$0x3f] %v240_v22  ;;  %v163_v35 = vrot.slane %v59_v21, %v382_v2 }
  0x26   :  { %273 = vst [vmem:[#allocation5 + $0x88] sm:$0x3f] %v241_v23  ;;  %274 = vst [vmem:[#allocation5 + $0x90] sm:$0x3f] %v242_v24  ;;  %v167_v36 = vrot.slane %v59_v21, %v384_v3  ;;  %v171_v37 = vrot.slane %v59_v21, %v386_v4  ;;  %v175_v38 = vrot.slane %v59_v21, %v388_v5 }
  0x27   :  { %275 = vst [vmem:[#allocation5 + $0x98] sm:$0x3f] %v243_v25  ;;  %276 = vst [vmem:[#allocation5 + $0xa0] sm:$0x3f] %v244_v28  ;;  %v179_v42 = vrot.slane %v59_v21, %v390_v6  ;;  %v183_v43 = vrot.slane %v59_v21, %v392_v7  ;;  %v187_v2 = vrot.slane %v59_v21, %v394_v8 }
  0x28   :  { %277 = vst [vmem:[#allocation5 + $0xa8] sm:$0x3f] %v245_v29  ;;  %278 = vst [vmem:[#allocation5 + $0xb0] sm:$0x3f] %v246_v30  ;;  %v191_v3 = vrot.slane %v59_v21, %v396_v9  ;;  %v248_v44 = vmul.f32 %v163_v35, %v48_v26  ;;  %v249_v4 = vmul.f32 %v167_v36, %v49_v27 }
  0x29   :  { %279 = vst [vmem:[#allocation5 + $0xb8] sm:$0x3f] %v247_v31  ;;  %v250_v45 = vmul.f32 %v171_v37, %v50_v32  ;;  %v251_v5 = vmul.f32 %v175_v38, %v51_v33  ;;  %v252_v46 = vmul.f32 %v179_v42, %v52_v34  ;;  %v253_v47 = vmul.f32 %v183_v43, %v53_v39 }
  0x2a   :  { %v254_v48 = vmul.f32 %v187_v2, %v54_v40  ;;  %v255_v49 = vmul.f32 %v191_v3, %v55_v41  ;;  %280 = vst [vmem:[#allocation5 + $0xc0] sm:$0x3f] %v248_v44  ;;  %281 = vst [vmem:[#allocation5 + $0xc8] sm:$0x3f] %v249_v4 }
  0x2b   :  { %282 = vst [vmem:[#allocation5 + $0xd0] sm:$0x3f] %v250_v45  ;;  %283 = vst [vmem:[#allocation5 + $0xd8] sm:$0x3f] %v251_v5 }
  0x2c   :  { %284 = vst [vmem:[#allocation5 + $0xe0] sm:$0x3f] %v252_v46  ;;  %285 = vst [vmem:[#allocation5 + $0xe8] sm:$0x3f] %v253_v47 }
  0x2d   :  { %286 = vst [vmem:[#allocation5 + $0xf0] sm:$0x3f] %v254_v48  ;;  %287 = vst [vmem:[#allocation5 + $0xf8] sm:$0x3f] %v255_v49 }
  0x2e   :  { %338 = shalt.err (!%p335_p12)
}
  0x2f   :  { %s339_s4 = scalar_lea.hbm %s459_s2, 4096 }
  0x30   :  { %p340_p13 = scmp.ne.s32.totalorder %s459_s2, %s339_s4  ;;  %p343_p0 = scmp.lt.u32.totalorder %s339_s4, %s459_s2 }
  0x32   :  { %p345_p1 = pnand %p343_p0, %p340_p13 }
  0x34   :  { %348 = shalt.err (!%p345_p1)
}
  0x35   :  { %297 = dma.vmem_to_hbm [thread:$0]  %s295_s29, 4096, %s459_s2, [#allocation4]  }
  0x36   :  { %351 = dma.done.wait [#allocation4], 4096  }
  0x37   :  { %352 = vsyncadd [#allocation4], 4294963200 }
  0x38   :  { %301 = vsyncpa [#allocation3], 1 }
  0x39   :  { %302 = vsyncpa [#allocation4], 1 }

</bundles_post_ra>
